<compile_context>
chip_gen: v7x
topology: tpu7x:2x2x1
jax: 0.10.0
libtpu: 0.0.40
codegen_flags: <defaults>
</compile_context>

<pallas_src>
import math

import jax
import jax.numpy as jnp
from jax import lax
from jax.experimental import pallas as pl
from jax.experimental.pallas import tpu as pltpu

_LANE = 128
# Sublane row alignment per element size (bytes -> packed rows per vreg tile).
_SUBLANE = {4: 8, 2: 16, 1: 32}


def _gelu_kernel(x_ref, o_ref):
    x = x_ref[...]
    # Exact GELU (erf form), computed in f32 then cast back to the I/O dtype.
    xf = x.astype(jnp.float32)
    inv_sqrt2 = jnp.float32(1.0 / math.sqrt(2.0))
    y = jnp.float32(0.5) * xf * (jnp.float32(1.0) + lax.erf(xf * inv_sqrt2))
    o_ref[...] = y.astype(o_ref.dtype)


def gpt2_gelu(x, *, row_tile=None):
    """Apply exact erf-GELU elementwise via a Pallas TPU kernel.

    x: array of any shape (GPT-2 uses [batch, seq, hidden]); returns the same
    shape/dtype.  `row_tile` optionally overrides the auto-selected block row
    count (mainly for testing).
    """
    orig_shape = x.shape
    total = int(x.size)
    if total == 0:
        return x

    itemsize = jnp.dtype(x.dtype).itemsize
    sublane = _SUBLANE.get(itemsize, 8)
    hidden = orig_shape[-1] if x.ndim >= 1 else 1

    pad_elems = 0
    if x.ndim >= 2 and hidden % _LANE == 0:
        # Hidden dim is already lane-dense: keep it on the lane axis.  The
        # (B, S, H) -> (B*S, H) reshape is layout-preserving (free).
        lane = hidden
        rows = total // hidden
        x2 = x.reshape(rows, lane)
        hidden_is_lane = True
    else:
        # Elementwise op: reshape the flat buffer into a 128-wide slab so all
        # loads/stores are unmasked full-vreg ops even when hidden < 128.
        lane = _LANE
        pad_elems = (-total) % _LANE
        flat = x.reshape(-1)
        if pad_elems:
            flat = jnp.pad(flat, (0, pad_elems))
        rows = (total + pad_elems) // _LANE
        x2 = flat.reshape(rows, lane)
        hidden_is_lane = False

    # --- Tile selection: aim for ~2 MiB per block.  in + out double-buffered
    # (~8 MiB) plus f32 intermediates stays comfortably inside the scoped
    # VMEM budget on v5e (16 MiB), v6e (32 MiB) and v7x (32 MiB scoped).
    if row_tile is None:
        target_block_bytes = 2 * 1024 * 1024
        row_tile = max(sublane, target_block_bytes // (lane * itemsize))
        row_tile = min(row_tile, 2048)
    # Align the tile to the sublane packing of this dtype.
    row_tile = max(sublane, (int(row_tile) // sublane) * sublane)

    if row_tile >= rows:
        # Whole (small) array in one block; block_shape == array shape is
        # always a legal layout.
        block_rows = rows
        grid = (1,)
    else:
        block_rows = row_tile
        grid = (pl.cdiv(rows, block_rows),)  # ragged last block is clipped

    block_bytes = block_rows * lane * itemsize
    # in + out, double-buffered, plus headroom for the f32 intermediates.
    vmem_limit = int(min(max(8 * block_bytes, 16 * 1024 * 1024),
                         32 * 1024 * 1024))

    out = pl.pallas_call(
        _gelu_kernel,
        out_shape=jax.ShapeDtypeStruct((rows, lane), x.dtype),
        grid_spec=pltpu.PrefetchScalarGridSpec(
            num_scalar_prefetch=0,
            grid=grid,
            in_specs=[pl.BlockSpec((block_rows, lane), lambda i: (i, 0))],
            out_specs=pl.BlockSpec((block_rows, lane), lambda i: (i, 0)),
        ),
        compiler_params=pltpu.CompilerParams(
            dimension_semantics=("parallel",),
            vmem_limit_bytes=vmem_limit,
        ),
    )(x2)

    if hidden_is_lane:
        return out.reshape(orig_shape)
    return out.reshape(-1)[:total].reshape(orig_shape)


if __name__ == "__main__":
    key = jax.random.PRNGKey(0)
    k0, k1, k2 = jax.random.split(key, 3)

    # 1) Small [batch, seq, hidden] consistent with the module's forward
    #    (hidden < 128 exercises the flatten-to-128-lane path).
    batch, seq, hidden = 2, 8, 32
    x = jax.random.normal(k0, (batch, seq, hidden), dtype=jnp.float32)
    y = jax.block_until_ready(gpt2_gelu(x))
    y_ref = jax.nn.gelu(x, approximate=False)
    assert y.shape == x.shape and y.dtype == x.dtype
    assert jnp.allclose(y, y_ref, atol=1e-6, rtol=1e-6), "mismatch (small)"

    # 2) Lane-dense hidden path with a multi-block grid (evenly divisible).
    x2 = jax.random.normal(k1, (4, 24, 128), dtype=jnp.float32)
    y2 = jax.block_until_ready(gpt2_gelu(x2, row_tile=16))
    assert jnp.allclose(y2, jax.nn.gelu(x2, approximate=False),
                        atol=1e-6, rtol=1e-6), "mismatch (tiled)"

    # 3) Ragged last block (rows not a multiple of the row tile).
    x3 = jax.random.normal(k2, (3, 24, 128), dtype=jnp.float32)  # rows = 72
    y3 = jax.block_until_ready(gpt2_gelu(x3, row_tile=32))       # grid = 3, last = 8 rows
    assert jnp.allclose(y3, jax.nn.gelu(x3, approximate=False),
                        atol=1e-6, rtol=1e-6), "mismatch (ragged)"

    # 4) bf16 path (sublane packing = 16).
    x4 = jax.random.normal(k2, (2, 16, 256), dtype=jnp.bfloat16)
    y4 = jax.block_until_ready(gpt2_gelu(x4))
    assert y4.dtype == jnp.bfloat16
    assert jnp.allclose(y4.astype(jnp.float32),
                        jax.nn.gelu(x4.astype(jnp.float32), approximate=False),
                        atol=2e-2, rtol=2e-2), "mismatch (bf16)"

    print("KERNEL_OK")
</pallas_src>

<mosaic_0001>
module attributes {stable_mosaic.version = 11 : i64} {
  func.func @_gelu_kernel(%arg0: i32, %arg1: memref<4x128xf32, #tpu.memory_space<vmem>>, %arg2: memref<4x128xf32, #tpu.memory_space<vmem>>) attributes {dimension_semantics = [#tpu.dimension_semantics<parallel>], iteration_bounds = array<i64: 1>, scalar_prefetch = 0 : i64, scratch_operands = 0 : i64, tpu.core_type = #tpu.core_type<tc>, window_params = [{transform_indices = @transform_0, window_bounds = array<i64: 4, 128>}, {transform_indices = @transform_1, window_bounds = array<i64: 4, 128>}]} {
    %c0 = arith.constant 0 : index
    %c0_0 = arith.constant 0 : index
    %0 = vector.load %arg1[%c0, %c0_0] : memref<4x128xf32, #tpu.memory_space<vmem>>, vector<4x128xf32>
    %cst = arith.constant 5.000000e-01 : f32
    %1 = vector.broadcast %cst : f32 to vector<4x128xf32>
    %2 = arith.mulf %1, %0 : vector<4x128xf32>
    %cst_1 = arith.constant 0.707106769 : f32
    %3 = vector.broadcast %cst_1 : f32 to vector<4x128xf32>
    %4 = arith.mulf %0, %3 : vector<4x128xf32>
    %5 = math.erf %4 : vector<4x128xf32>
    %cst_2 = arith.constant 1.000000e+00 : f32
    %6 = vector.broadcast %cst_2 : f32 to vector<4x128xf32>
    %7 = arith.addf %6, %5 : vector<4x128xf32>
    %8 = arith.mulf %2, %7 : vector<4x128xf32>
    %c0_3 = arith.constant 0 : index
    %c0_4 = arith.constant 0 : index
    %9 = vector.load %arg2[%c0_3, %c0_4] : memref<4x128xf32, #tpu.memory_space<vmem>>, vector<4x128xf32>
    tpu.vector_store %arg2[%c0_3, %c0_4], %8 {strides = array<i32>} : memref<4x128xf32, #tpu.memory_space<vmem>>, vector<4x128xf32>,
    return
  }
  func.func @transform_0(%arg0: i32) -> (i32, i32) {
    %c0_i32 = arith.constant 0 : i32
    %c0_i32_0 = arith.constant 0 : i32
    return %arg0, %c0_i32 : i32, i32
  }
  func.func @transform_1(%arg0: i32) -> (i32, i32) {
    %c0_i32 = arith.constant 0 : i32
    %c0_i32_0 = arith.constant 0 : i32
    return %arg0, %c0_i32 : i32, i32
  }
}

</mosaic_0001>

<bundles_post_ra>
// kernel: tpu_custom_call.1
= control target key start
LH: loop header
LB: loop body
LE: loop exit
PB: predicated region body
PF: predicated region fallthrough
CT: control target
= control target key end

     0   :  { %6 = vsyncpa [#allocation3], 0  ;;  %s131_s0 = inlined_call_operand.hbm [shape: f32[4,128], index: 0, kind: input, shape index: {}]   ;;  %s132_s1 = inlined_call_operand.hbm [shape: f32[4,128], index: 1, kind: output, shape index: {}]  }
   0x1   :  { %7 = vsyncpa [#allocation4], 0  ;;  %s95_s6 = smov [#allocation2]   ;;  %s47_s10 = scalar_lea.hbm %s131_s0, 64 }
   0x2   :  { %s14_s7 = sshll.u32 %s95_s6, 4  ;;  %p48_p0 = scmp.ne.s32.totalorder %s131_s0, %s47_s10  ;;  %s15_s7 = int_to_ptr.vmem [resolvable:$true] %s14_s7 }
   0x3   :  { %p51_p1 = scmp.lt.u32.totalorder %s47_s10, %s131_s0 }
   0x5   :  { %p53_p2 = pnand %p51_p1, %p48_p0 }
   0x7   :  { %56 = shalt.err (!%p53_p2)
}
   0x8   :  { %s57_s15 = scalar_lea.vmem %s15_s7, 64  ;;  %p62_p4 = scmp.lt.s32.totalorder %s15_s7, %s15_s7 }
   0x9   :  { %p58_p3 = scmp.ne.s32.totalorder %s15_s7, %s57_s15  ;;  %p63_p5 = scmp.lt.s32.totalorder %s57_s15, %s57_s15 }
   0xb   :  { %p64_p6 = por %p63_p5, %p62_p4 }
   0xd   :  { %p65_p7 = pnand %p64_p6, %p58_p3 }
   0xf   :  { %68 = shalt.err (!%p65_p7)
}
  0x10   :  { %17 = dma.hbm_to_vmem [thread:$0]  %s131_s0, 64, %s15_s7, [#allocation3]  }
  0x11   :  { %91 = dma.done.wait [#allocation3], 64  }
  0x12   :  { %92 = vsyncadd [#allocation3], 4294967232  ;;  %v21_v0 = vld [vmem:[#allocation2] sm:$0xf]  ;;  %s96_s18 = smov [#allocation5]  }
  0x13   :  { %v23_v1 = vmul.f32 0.70710677, %v21_v0  ;;  %v22_v2 = vmul.f32 0.5, %v21_v0  ;;  %s34_s19 = sshll.u32 %s96_s18, 4  ;;  %s35_s19 = int_to_ptr.vmem [resolvable:$true] %s34_s19 }
  0x14   :  { %s69_s20 = scalar_lea.vmem %s35_s19, 64  ;;  %p74_p9 = scmp.lt.s32.totalorder %s35_s19, %s35_s19 }
  0x15   :  { %45 = verf.f32 %v23_v1  ;;  %p70_p8 = scmp.ne.s32.totalorder %s35_s19, %s69_s20  ;;  %p75_p10 = scmp.lt.s32.totalorder %s69_s20, %s69_s20 }
  0x17   :  { %p76_p11 = por %p75_p10, %p74_p9 }
  0x19   :  { %p77_p12 = pnand %p76_p11, %p70_p8 }
  0x1f   :  { %v46_v3 = vpop.eup %45 }
  0x20   :  { %v25_v4 = vadd.f32 1.0, %v46_v3 }
  0x22   :  { %v26_v5 = vmul.f32 %v25_v4, %v22_v2 }
  0x24   :  { %27 = vst [vmem:[#allocation5] sm:$0xf] %v26_v5 }
  0x25   :  { %80 = shalt.err (!%p77_p12)
}
  0x26   :  { %s81_s22 = scalar_lea.hbm %s132_s1, 64 }
  0x27   :  { %p82_p13 = scmp.ne.s32.totalorder %s132_s1, %s81_s22  ;;  %p85_p0 = scmp.lt.u32.totalorder %s81_s22, %s132_s1 }
  0x29   :  { %p87_p1 = pnand %p85_p0, %p82_p13 }
  0x2b   :  { %90 = shalt.err (!%p87_p1)
}
  0x2c   :  { %37 = dma.vmem_to_hbm [thread:$0]  %s35_s19, 64, %s132_s1, [#allocation4]  }
  0x2d   :  { %93 = dma.done.wait [#allocation4], 64  }
  0x2e   :  { %94 = vsyncadd [#allocation4], 4294967232 }
  0x2f   :  { %41 = vsyncpa [#allocation3], 1 }
  0x30   :  { %42 = vsyncpa [#allocation4], 1 }

</bundles_post_ra>
